<compile_context>
chip_gen: v6e
topology: v6e:2x2x1
jax: 0.10.0
libtpu: 0.0.40
codegen_flags: <defaults>
</compile_context>

<pallas_src>
import functools
import math

import jax
import jax.numpy as jnp
from jax.experimental import pallas as pl
from jax.experimental.pallas import tpu as pltpu


# ----------------------------------------------------------------------------
# Hardware-aware tile targets / VMEM budget.
# ----------------------------------------------------------------------------
def _hw_config():
    try:
        cap = int(pltpu.get_tpu_info().vmem_capacity_bytes)
    except Exception:
        cap = None
    if cap is None:
        return 512, 512, 512, None
    if cap >= 128 * 1024 * 1024:                       # v5e / v6e
        return 512, 512, 512, min(int(cap * 0.75), 100 * 1024 * 1024)
    if cap >= 64 * 1024 * 1024:                        # v7x: 512-tiles fit easily
        return 512, 512, 512, int(cap * 0.75)
    return 256, 256, 256, None


_TM, _TN, _TK, _VMEM_LIMIT = _hw_config()


def _pick_div_tile(dim, target, align):
    """Largest multiple of `align` <= target that divides `dim`; else `dim`."""
    if dim <= target:
        return dim
    t = (target // align) * align
    while t >= align:
        if dim % t == 0:
            return t
        t -= align
    return dim


def _pick_tile(dim, target, align):
    """Divisible tile if one exists, otherwise `target` (cdiv + masked edge)."""
    t = _pick_div_tile(dim, target, align)
    return t if t <= target else target


# ----------------------------------------------------------------------------
# LayerNorm (eps=1e-5, affine) - row-tiled, bf16 output (f32 statistics).
# ----------------------------------------------------------------------------
def _layernorm_kernel(x_ref, g_ref, b_ref, o_ref):
    x = x_ref[...].astype(jnp.float32)
    mean = jnp.mean(x, axis=-1, keepdims=True)
    var = jnp.mean(jnp.square(x - mean), axis=-1, keepdims=True)
    xhat = (x - mean) * jax.lax.rsqrt(var + 1e-5)
    o_ref[...] = (xhat * g_ref[...] + b_ref[...]).astype(o_ref.dtype)


def layernorm(x2d, gamma, beta, out_dtype=jnp.bfloat16):
    n, e = x2d.shape
    bm = n if n <= _TM else _TM
    return pl.pallas_call(
        _layernorm_kernel,
        grid=(pl.cdiv(n, bm),),
        in_specs=[pl.BlockSpec((bm, e), lambda i: (i, 0)),
                  pl.BlockSpec((1, e), lambda i: (0, 0)),
                  pl.BlockSpec((1, e), lambda i: (0, 0))],
        out_specs=pl.BlockSpec((bm, e), lambda i: (i, 0)),
        out_shape=jax.ShapeDtypeStruct((n, e), out_dtype),
        compiler_params=pltpu.CompilerParams(
            dimension_semantics=("parallel",),
            vmem_limit_bytes=_VMEM_LIMIT),
    )(x2d,
      gamma.reshape(1, e).astype(jnp.float32),
      beta.reshape(1, e).astype(jnp.float32))


# ----------------------------------------------------------------------------
# Tiled Linear: y = x @ w + b, optional exact-erf GELU and fused residual add.
# bf16 MXU operands, f32 accumulation in VMEM scratch, epilogue on last K step.
# ----------------------------------------------------------------------------
def _linear_kernel(x_ref, w_ref, b_ref, *rest, gelu, add_residual):
    if add_residual:
        res_ref, o_ref, acc_ref = rest
    else:
        o_ref, acc_ref = rest
        res_ref = None

    k = pl.program_id(2)

    @pl.when(k == 0)
    def _():
        acc_ref[...] = jnp.zeros_like(acc_ref)

    acc_ref[...] += jnp.dot(x_ref[...].astype(jnp.bfloat16),
                            w_ref[...].astype(jnp.bfloat16),
                            preferred_element_type=jnp.float32)

    @pl.when(k == pl.num_programs(2) - 1)
    def _():
        y = acc_ref[...] + b_ref[...].astype(jnp.float32)
        if gelu:
            # nn.GELU() default = exact erf.
            y = 0.5 * y * (1.0 + jax.lax.erf(y * (1.0 / math.sqrt(2.0))))
        if add_residual:
            y = y + res_ref[...].astype(jnp.float32)
        o_ref[...] = y.astype(o_ref.dtype)


def linear(x2d, w, b=None, *, gelu=False, residual=None, out_dtype=jnp.bfloat16):
    m, k = x2d.shape
    k2, n = w.shape
    assert k == k2
    if b is None:
        b = jnp.zeros((n,), jnp.float32)

    bm = m if m <= _TM else _TM
    bn = _pick_tile(n, _TN, 128)
    bk = _pick_div_tile(k, _TK, 128)          # K tile must divide K exactly
    k_steps = k // bk
    grid = (pl.cdiv(m, bm), pl.cdiv(n, bn), k_steps)

    # Deeper buffering on the streamed weight operand when K is actually tiled
    # (extra buffers are nearly free in VMEM; hides HBM latency on short K loops).
    if k_steps > 1:
        w_spec = pl.BlockSpec((bk, bn), lambda i, j, kk: (kk, j),
                              pipeline_mode=pl.Buffered(3))
    else:
        w_spec = pl.BlockSpec((bk, bn), lambda i, j, kk: (kk, j))

    operands = [x2d, w, b.reshape(1, n).astype(jnp.float32)]
    in_specs = [pl.BlockSpec((bm, bk), lambda i, j, kk: (i, kk)),
                w_spec,
                pl.BlockSpec((1, bn), lambda i, j, kk: (0, j))]
    if residual is not None:
        operands.append(residual)
        in_specs.append(pl.BlockSpec((bm, bn), lambda i, j, kk: (i, j)))

    kernel = functools.partial(_linear_kernel, gelu=gelu,
                               add_residual=residual is not None)
    return pl.pallas_call(
        kernel,
        grid=grid,
        in_specs=in_specs,
        out_specs=pl.BlockSpec((bm, bn), lambda i, j, kk: (i, j)),
        out_shape=jax.ShapeDtypeStruct((m, n), out_dtype),
        scratch_shapes=[pltpu.VMEM((bm, bn), jnp.float32)],
        compiler_params=pltpu.CompilerParams(
            dimension_semantics=("parallel", "parallel", "arbitrary"),
            vmem_limit_bytes=_VMEM_LIMIT),
    )(*operands)


# ----------------------------------------------------------------------------
# LM head (no bias): x (M,E) @ W (E,vocab).  Single K block, activation row
# block resident across the vocab sweep, W streamed ~once, bf16 logits.
# ----------------------------------------------------------------------------
def _lm_head_kernel(x_ref, w_ref, o_ref):
    o_ref[...] = jnp.dot(x_ref[...].astype(jnp.bfloat16),
                         w_ref[...].astype(jnp.bfloat16),
                         preferred_element_type=jnp.float32).astype(o_ref.dtype)


def lm_head(x2d, w, *, out_dtype=jnp.bfloat16):
    m, e = x2d.shape
    e2, n = w.shape
    assert e == e2
    # Keep up to ~6 MiB of the bf16 activation resident per row block.
    row_cap = max(8, (6 * 1024 * 1024) // (e * 2))
    row_cap -= row_cap % 8
    bm = m if m <= row_cap else row_cap
    bn = _pick_tile(n, _TN, 128)
    grid = (pl.cdiv(m, bm), pl.cdiv(n, bn))   # vocab axis innermost
    return pl.pallas_call(
        _lm_head_kernel,
        grid=grid,
        in_specs=[pl.BlockSpec((bm, e), lambda i, j: (i, 0)),
                  pl.BlockSpec((e, bn), lambda i, j: (0, j))],
        out_specs=pl.BlockSpec((bm, bn), lambda i, j: (i, j)),
        out_shape=jax.ShapeDtypeStruct((m, n), out_dtype),
        compiler_params=pltpu.CompilerParams(
            dimension_semantics=("parallel", "parallel"),
            vmem_limit_bytes=_VMEM_LIMIT),
    )(x2d, w)


# ----------------------------------------------------------------------------
# Flash-style causal multi-head attention on batch-major 2-D activations.
# q/k/v are (tq, H*Dh) / (tk, H*Dh) lane-dense blocks read straight from the
# (B*S, .) QKV activation; output is written lane-dense into (B*S, E).
# Grid: (B, S/tq, S/tk); heads handled by a static in-kernel loop.
# ----------------------------------------------------------------------------
def _attn_kernel(q_ref, k_ref, v_ref, o_ref, m_sc, l_sc, acc_sc,
                 *, scale, heads, dh, tq, tk):
    qi = pl.program_id(1)
    ki = pl.program_id(2)

    @pl.when(ki == 0)
    def _():
        m_sc[...] = jnp.full_like(m_sc, -1e30)     # finite: no inf-inf NaN risk
        l_sc[...] = jnp.zeros_like(l_sc)
        acc_sc[...] = jnp.zeros_like(acc_sc)

    last_ki = (qi * tq + tq - 1) // tk             # last kv tile with live keys
    live = ki <= last_ki                           # otherwise fully masked
    straddle = ki * tk + tk - 1 > qi * tq          # tile touches the diagonal

    def process(masked):
        q = q_ref[...]                             # (tq, heads*dh) bf16
        k = k_ref[...]                             # (tk, heads*dh) bf16
        v = v_ref[...]
        if masked:
            row = qi * tq + jax.lax.broadcasted_iota(jnp.int32, (tq, tk), 0)
            col = ki * tk + jax.lax.broadcasted_iota(jnp.int32, (tq, tk), 1)
            neg = jnp.where(col > row, jnp.float32(-1e30), jnp.float32(0.0))
        for h in range(heads):
            lo = h * dh
            qh = q[:, lo:lo + dh]
            kh = k[:, lo:lo + dh]
            vh = v[:, lo:lo + dh]
            s = jax.lax.dot_general(
                qh, kh, (((1,), (1,)), ((), ())),
                preferred_element_type=jnp.float32) * scale
            if masked:
                s = s + neg
            m_prev = m_sc[h]                                       # (tq, 1)
            m_new = jnp.maximum(m_prev, jnp.max(s, axis=-1, keepdims=True))
            alpha = jnp.exp(m_prev - m_new)
            p = jnp.exp(s - m_new)
            l_sc[h] = alpha * l_sc[h] + jnp.sum(p, axis=-1, keepdims=True)
            acc_sc[h] = alpha * acc_sc[h] + jnp.dot(
                p.astype(v.dtype), vh, preferred_element_type=jnp.float32)
            m_sc[h] = m_new

    @pl.when(jnp.logical_and(live, straddle))
    def _():
        process(True)                              # diagonal tile: apply mask

    @pl.when(jnp.logical_and(live, jnp.logical_not(straddle)))
    def _():
        process(False)                             # fully-visible tile: no mask

    @pl.when(ki == pl.num_programs(2) - 1)
    def _():
        for h in range(heads):
            inv_l = pl.reciprocal(l_sc[h], approx=True)
            o_ref[:, h * dh:(h + 1) * dh] = (acc_sc[h] * inv_l).astype(o_ref.dtype)


def causal_attention(q_arr, k_arr, v_arr, q_cb, k_cb, v_cb, *,
                     batch, seq, heads, dh, out_dtype=jnp.bfloat16):
    """q/k/v arrays are (B*S, C) batch-major; *_cb is the column-block index of
    the E-wide Q/K/V slice inside each array (0/1/2 for a fused QKV array)."""
    e = heads * dh
    scale = 1.0 / math.sqrt(dh)
    tq = _pick_div_tile(seq, 256, 8)
    tk = _pick_div_tile(seq, 256, 8)
    nq, nk = seq // tq, seq // tk

    def q_idx(b, qi, ki):
        return (b * nq + qi, q_cb)

    def kv_idx_factory(cb):
        def idx(b, qi, ki):
            # Clamp to the last live tile: fully-masked future tiles map to an
            # already-resident block => no new DMA for dead grid steps.
            last = (qi * tq + tq - 1) // tk
            return (b * nk + jnp.minimum(ki, last), cb)
        return idx

    kernel = functools.partial(_attn_kernel, scale=scale, heads=heads,
                               dh=dh, tq=tq, tk=tk)
    return pl.pallas_call(
        kernel,
        grid=(batch, nq, nk),
        in_specs=[pl.BlockSpec((tq, e), q_idx),
                  pl.BlockSpec((tk, e), kv_idx_factory(k_cb)),
                  pl.BlockSpec((tk, e), kv_idx_factory(v_cb))],
        out_specs=pl.BlockSpec((tq, e), lambda b, qi, ki: (b * nq + qi, 0)),
        out_shape=jax.ShapeDtypeStruct((batch * seq, e), out_dtype),
        scratch_shapes=[pltpu.VMEM((heads, tq, 1), jnp.float32),
                        pltpu.VMEM((heads, tq, 1), jnp.float32),
                        pltpu.VMEM((heads, tq, dh), jnp.float32)],
        compiler_params=pltpu.CompilerParams(
            dimension_semantics=("parallel", "parallel", "arbitrary"),
            vmem_limit_bytes=_VMEM_LIMIT),
    )(q_arr, k_arr, v_arr)


# ----------------------------------------------------------------------------
# Transformer block (pre-LN; residuals are added to the NORMALIZED tensor,
# exactly as the PyTorch reference does).  Hidden state is batch-major (B*S,E).
# ----------------------------------------------------------------------------
def block_forward(h2d, p, *, batch, seq, num_heads):
    e = h2d.shape[-1]
    dh = e // num_heads

    x = layernorm(h2d, p["ln0_g"], p["ln0_b"])                        # bf16

    qkv = linear(x, p["w_in"], p["b_in"], out_dtype=jnp.bfloat16)     # (B*S,3E)
    if e % 128 == 0:
        # Heads live in contiguous lane slices of the fused QKV output; the
        # attention kernel reads Q/K/V straight out of it (no XLA transpose).
        attn = causal_attention(qkv, qkv, qkv, 0, 1, 2,
                                batch=batch, seq=seq, heads=num_heads, dh=dh)
    else:
        # TODO(synk): sub-128-lane column blocks can't slice the fused QKV via
        # BlockSpec; fall back to cheap XLA column slices at these tiny sizes.
        q2d = qkv[:, :e]
        k2d = qkv[:, e:2 * e]
        v2d = qkv[:, 2 * e:]
        attn = causal_attention(q2d, k2d, v2d, 0, 0, 0,
                                batch=batch, seq=seq, heads=num_heads, dh=dh)

    # Output projection with the residual (+x) fused into the epilogue.
    x = linear(attn, p["w_out"], p["b_out"], residual=x)              # = x + attn

    x2 = layernorm(x, p["ln1_g"], p["ln1_b"])
    m = linear(x2, p["w_fc1"], p["b_fc1"], gelu=True)
    out = linear(m, p["w_fc2"], p["b_fc2"], residual=x2)              # = x2 + mlp
    return out


# ----------------------------------------------------------------------------
# Full model
# ----------------------------------------------------------------------------
def gpt2_forward(tokens, params, num_heads):
    # tokens: (S, B) int32 token ids (seq-first, like the PyTorch reference).
    S, B = tokens.shape
    E = params["wte"].shape[-1]

    # Embedding gathers stay in XLA; hidden state is kept batch-major so every
    # per-layer kernel sees a lane-dense 2-D (B*S, E) activation.
    tok_bm = tokens.T                                                  # (B, S)
    w_emb = jnp.take(params["wte"], tok_bm, axis=0)                    # (B,S,E)
    p_emb = jnp.take(params["wpe"], jnp.arange(S), axis=0)             # (S,E)
    h2d = (w_emb + p_emb[None]).astype(jnp.bfloat16).reshape(B * S, E)

    for lp in params["layers"]:
        h2d = block_forward(h2d, lp, batch=B, seq=S, num_heads=num_heads)

    # One small E-wide transpose back to (S, B, .) before the vocab-wide head.
    h_sb = h2d.reshape(B, S, E).transpose(1, 0, 2).reshape(S * B, E)
    logits = lm_head(h_sb, params["w_head"])                           # bf16
    return logits.reshape(S, B, -1)


# ----------------------------------------------------------------------------
# Deterministic synthetic parameters (matmul weights stored in bf16).
# ----------------------------------------------------------------------------
def init_params(key, vocab, n_layers, E, n_pos):
    keys = jax.random.split(key, 3 + n_layers)

    def nrm(k, shape, scale=0.02, dtype=jnp.bfloat16):
        return (scale * jax.random.normal(k, shape, jnp.float32)).astype(dtype)

    params = {
        "wte": nrm(keys[0], (vocab, E), dtype=jnp.float32),
        "wpe": nrm(keys[1], (n_pos, E), dtype=jnp.float32),
        "w_head": nrm(keys[2], (E, vocab)),
        "layers": [],
    }
    for i in range(n_layers):
        lk = jax.random.split(keys[3 + i], 4)
        params["layers"].append({
            "ln0_g": jnp.ones((E,), jnp.float32),
            "ln0_b": jnp.zeros((E,), jnp.float32),
            "ln1_g": jnp.ones((E,), jnp.float32),
            "ln1_b": jnp.zeros((E,), jnp.float32),
            "w_in": nrm(lk[0], (E, 3 * E)),
            "b_in": jnp.zeros((3 * E,), jnp.float32),
            "w_out": nrm(lk[1], (E, E)),
            "b_out": jnp.zeros((E,), jnp.float32),
            "w_fc1": nrm(lk[2], (E, 4 * E)),
            "b_fc1": jnp.zeros((4 * E,), jnp.float32),
            "w_fc2": nrm(lk[3], (4 * E, E)),
            "b_fc2": jnp.zeros((E,), jnp.float32),
        })
    return params


if __name__ == "__main__":
    vocab_size, num_layers, emb_dim, num_heads, num_positions = 64, 2, 32, 4, 16
    S, B = 8, 2

    key = jax.random.PRNGKey(0)
    pkey, tkey = jax.random.split(key)
    params = init_params(pkey, vocab_size, num_layers, emb_dim, num_positions)
    tokens = jax.random.randint(tkey, (S, B), 0, vocab_size, dtype=jnp.int32)

    logits = gpt2_forward(tokens, params, num_heads)
    jax.block_until_ready(logits)
    assert logits.shape == (S, B, vocab_size)
    assert bool(jnp.all(jnp.isfinite(logits.astype(jnp.float32))))
    print("KERNEL_OK")
</pallas_src>

<mosaic_0001>
module attributes {stable_mosaic.version = 11 : i64} {
  func.func @_layernorm_kernel(%arg0: i32, %arg1: memref<16x32xbf16, #tpu.memory_space<vmem>>, %arg2: memref<1x32xf32, #tpu.memory_space<vmem>>, %arg3: memref<1x32xf32, #tpu.memory_space<vmem>>, %arg4: memref<16x32xbf16, #tpu.memory_space<vmem>>) attributes {dimension_semantics = [#tpu.dimension_semantics<parallel>], iteration_bounds = array<i64: 1>, scalar_prefetch = 0 : i64, scratch_operands = 0 : i64, tpu.core_type = #tpu.core_type<tc>, window_params = [{transform_indices = @transform_0, window_bounds = array<i64: 16, 32>}, {pipeline_mode = #tpu.pipeline_mode<synchronous>, transform_indices = @transform_1, window_bounds = array<i64: 1, 32>}, {pipeline_mode = #tpu.pipeline_mode<synchronous>, transform_indices = @transform_2, window_bounds = array<i64: 1, 32>}, {transform_indices = @transform_3, window_bounds = array<i64: 16, 32>}]} {
    %c0 = arith.constant 0 : index
    %c0_0 = arith.constant 0 : index
    %0 = vector.load %arg1[%c0, %c0_0] : memref<16x32xbf16, #tpu.memory_space<vmem>>, vector<16x32xbf16>
    %1 = arith.extf %0 : vector<16x32xbf16> to vector<16x32xf32>
    %cst = arith.constant dense<0.000000e+00> : vector<16xf32>
    %2 = vector.multi_reduction <add>, %1, %cst [1] : vector<16x32xf32> to vector<16xf32>
    %3 = vector.shape_cast %2 : vector<16xf32> to vector<16x1xf32>
    %cst_1 = arith.constant 3.200000e+01 : f32
    %4 = vector.broadcast %cst_1 : f32 to vector<16x1xf32>
    %5 = arith.divf %3, %4 : vector<16x1xf32>
    %6 = vector.broadcast %5 : vector<16x1xf32> to vector<16x32xf32>
    %7 = arith.subf %1, %6 : vector<16x32xf32>
    %8 = arith.mulf %7, %7 : vector<16x32xf32>
    %cst_2 = arith.constant dense<0.000000e+00> : vector<16xf32>
    %9 = vector.multi_reduction <add>, %8, %cst_2 [1] : vector<16x32xf32> to vector<16xf32>
    %10 = vector.shape_cast %9 : vector<16xf32> to vector<16x1xf32>
    %cst_3 = arith.constant 3.200000e+01 : f32
    %11 = vector.broadcast %cst_3 : f32 to vector<16x1xf32>
    %12 = arith.divf %10, %11 : vector<16x1xf32>
    %13 = vector.broadcast %5 : vector<16x1xf32> to vector<16x32xf32>
    %14 = arith.subf %1, %13 : vector<16x32xf32>
    %cst_4 = arith.constant 9.99999974E-6 : f32
    %15 = vector.broadcast %cst_4 : f32 to vector<16x1xf32>
    %16 = arith.addf %12, %15 : vector<16x1xf32>
    %17 = math.rsqrt %16 : vector<16x1xf32>
    %18 = vector.broadcast %17 : vector<16x1xf32> to vector<16x32xf32>
    %19 = arith.mulf %14, %18 : vector<16x32xf32>
    %c0_5 = arith.constant 0 : index
    %c0_6 = arith.constant 0 : index
    %20 = vector.load %arg2[%c0_5, %c0_6] : memref<1x32xf32, #tpu.memory_space<vmem>>, vector<1x32xf32>
    %21 = vector.broadcast %20 : vector<1x32xf32> to vector<16x32xf32>
    %22 = arith.mulf %19, %21 : vector<16x32xf32>
    %c0_7 = arith.constant 0 : index
    %c0_8 = arith.constant 0 : index
    %23 = vector.load %arg3[%c0_7, %c0_8] : memref<1x32xf32, #tpu.memory_space<vmem>>, vector<1x32xf32>
    %24 = vector.broadcast %23 : vector<1x32xf32> to vector<16x32xf32>
    %25 = arith.addf %22, %24 : vector<16x32xf32>
    %26 = arith.truncf %25 : vector<16x32xf32> to vector<16x32xbf16>
    %c0_9 = arith.constant 0 : index
    %c0_10 = arith.constant 0 : index
    %27 = vector.load %arg4[%c0_9, %c0_10] : memref<16x32xbf16, #tpu.memory_space<vmem>>, vector<16x32xbf16>
    tpu.vector_store %arg4[%c0_9, %c0_10], %26 {strides = array<i32>} : memref<16x32xbf16, #tpu.memory_space<vmem>>, vector<16x32xbf16>,
    return
  }
  func.func @transform_0(%arg0: i32) -> (i32, i32) {
    %c0_i32 = arith.constant 0 : i32
    %c0_i32_0 = arith.constant 0 : i32
    return %arg0, %c0_i32 : i32, i32
  }
  func.func @transform_1(%arg0: i32) -> (i32, i32) {
    %c0_i32 = arith.constant 0 : i32
    %c0_i32_0 = arith.constant 0 : i32
    %c0_i32_1 = arith.constant 0 : i32
    return %c0_i32, %c0_i32_0 : i32, i32
  }
  func.func @transform_2(%arg0: i32) -> (i32, i32) {
    %c0_i32 = arith.constant 0 : i32
    %c0_i32_0 = arith.constant 0 : i32
    %c0_i32_1 = arith.constant 0 : i32
    return %c0_i32, %c0_i32_0 : i32, i32
  }
  func.func @transform_3(%arg0: i32) -> (i32, i32) {
    %c0_i32 = arith.constant 0 : i32
    %c0_i32_0 = arith.constant 0 : i32
    return %arg0, %c0_i32 : i32, i32
  }
}

</mosaic_0001>

<bundles_post_ra>
// kernel: tpu_custom_call.1
= control target key start
LH: loop header
LB: loop body
LE: loop exit
PB: predicated region body
PF: predicated region fallthrough
CT: control target
= control target key end

     0   :  { %8 = vsyncpa [#allocation3], 0  ;;  %s215_s0 = inlined_call_operand.hbm [shape: bf16[16,32], index: 0, kind: input, shape index: {}]   ;;  %s216_s1 = inlined_call_operand.vmem [shape: f32[1,32], index: 1, kind: input, shape index: {}]   ;;  %s217_s2 = inlined_call_operand.vmem [shape: f32[1,32], index: 2, kind: input, shape index: {}]   ;;  %s218_s3 = inlined_call_operand.hbm [shape: bf16[16,32], index: 3, kind: output, shape index: {}]  }
   0x1   :  { %9 = vsyncpa [#allocation4], 0  ;;  %s169_s12 = smov [#allocation2]  }
   0x2   :  { %s15_s13 = sshll.u32 %s169_s12, 4  ;;  %s16_s13 = int_to_ptr.vmem [resolvable:$true] %s15_s13 }
   0x3   :  { %s133_s14 = scalar_lea.vmem %s16_s13, 128  ;;  %p138_p1 = scmp.lt.s32.totalorder %s16_s13, %s16_s13 }
   0x4   :  { %p134_p0 = scmp.ne.s32.totalorder %s16_s13, %s133_s14  ;;  %p139_p2 = scmp.lt.s32.totalorder %s133_s14, %s133_s14 }
   0x6   :  { %p140_p3 = por %p139_p2, %p138_p1 }
   0x8   :  { %p141_p4 = pnand %p140_p3, %p134_p0 }
   0xa   :  { %144 = shalt.err (!%p141_p4)
}
   0xb   :  { %s170_s15 = smov 64   ;;  %s171_s16 = smov 4  }
   0xc   :  { %21 = dma.hbm_to_vmem [thread:$0]  %s215_s0, 128, %s16_s13, [#allocation3], %s170_s15, %s170_s15, %s171_s16  }
   0xd   :  { %165 = dma.done.wait [#allocation3], 128  }
   0xe   :  { %166 = vsyncadd [#allocation3], 4294967168  ;;  %v114_v0 = vld [vmem:[#allocation2] sm:$0xff]   ;;  %vm33_vm0 = vcmask 261120   ;;  %vm87_vm1 = vcmask 257024   ;;  %s172_s22 = smov [#allocation5]  }
   0xf   :  { %v115_v1 = vunpack.c.l.bf16 %v114_v0  ;;  %v116_v2 = vunpack.c.h.bf16 %v114_v0  ;;  %v107_v22 = vld [vmem:[%s216_s1] ss:$0 sm:$0xff]  ;;  %s95_s23 = sshll.u32 %s172_s22, 4  ;;  %s96_s23 = int_to_ptr.vmem [resolvable:$true] %s95_s23 }
  0x10   :  { %v108_v24 = vld [vmem:[%s217_s2] ss:$0 sm:$0xff]  ;;  %s145_s1 = scalar_lea.vmem %s96_s23, 128  ;;  %p150_p6 = scmp.lt.s32.totalorder %s96_s23, %s96_s23 }
  0x11   :  { %v34_v3 = vsel %vm33_vm0, %v115_v1, 0.0  ;;  %v37_v4 = vsel %vm33_vm0, %v116_v2, 0.0  ;;  %p146_p5 = scmp.ne.s32.totalorder %s96_s23, %s145_s1  ;;  %p151_p7 = scmp.lt.s32.totalorder %s145_s1, %s145_s1 }
  0x12   :  { %35 = vadd.xlane.f32.xlu0 %v34_v3 }
  0x13   :  { %p152_p8 = por %p151_p7, %p150_p6 }
  0x15   :  { %p153_p9 = pnand %p152_p8, %p146_p5 }
  0x16   :  { %38 = vadd.xlane.f32.xlu0 %v37_v4 }
  0x9b   :  { %v36_v5 = vpop.xlane.xlu0 %35 }
  0x9c   :  { %v41_v6 = vmul.f32 0.03125, %v36_v5 }
  0x9e   :  { %v43_v7 = vsub.f32 %v115_v1, %v41_v6 }
  0x9f   :  { %v39_v8 = vpop.xlane.xlu0 %38 }
  0xa0   :  { %v42_v9 = vmul.f32 0.03125, %v39_v8  ;;  %v45_v10 = vmul.f32 %v43_v7, %v43_v7 }
  0xa2   :  { %v44_v11 = vsub.f32 %v116_v2, %v42_v9  ;;  %v47_v12 = vsel %vm33_vm0, %v45_v10, 0.0 }
  0xa3   :  { %48 = vadd.xlane.f32.xlu1 %v47_v12 }
  0xa4   :  { %v46_v13 = vmul.f32 %v44_v11, %v44_v11 }
  0xa6   :  { %v50_v14 = vsel %vm33_vm0, %v46_v13, 0.0 }
  0xa7   :  { %51 = vadd.xlane.f32.xlu1 %v50_v14 }
 0x12c   :  { %v49_v15 = vpop.xlane.xlu1 %48 }
 0x12d   :  { %v53_v16 = vmul.f32 0.03125, %v49_v15 }
 0x12f   :  { %v55_v17 = vadd.f32 1e-05, %v53_v16 }
 0x130   :  { %v52_v18 = vpop.xlane.xlu1 %51 }
 0x131   :  { %121 = vrsqrt.f32 %v55_v17  ;;  %v54_v19 = vmul.f32 0.03125, %v52_v18 }
 0x133   :  { %v56_v20 = vadd.f32 1e-05, %v54_v19 }
 0x135   :  { %123 = vrsqrt.f32 %v56_v20 }
 0x13e   :  { %v122_v21 = vpop.eup %121 }
 0x13f   :  { %v59_v23 = vmul.f32 %v122_v21, %v43_v7 }
 0x141   :  { %v68_v25 = vmul.f32 %v107_v22, %v59_v23 }
 0x142   :  { %v124_v26 = vpop.eup %123 }
 0x143   :  { %v60_v27 = vmul.f32 %v124_v26, %v44_v11  ;;  %v77_v28 = vadd.f32 %v108_v24, %v68_v25 }
 0x145   :  { %v69_v29 = vmul.f32 %v107_v22, %v60_v27  ;;  %v111_v30 = vpack.c.bf16 %v77_v28, %v77_v28 }
 0x147   :  { %v78_v31 = vadd.f32 %v108_v24, %v69_v29  ;;  %88 = vst.msk [vmem:[#allocation5] sm:$0xf] %vm87_vm1, %v111_v30 }
 0x149   :  { %v112_v32 = vpack.c.bf16 %v78_v31, %v78_v31 }
 0x14b   :  { %89 = vst.msk [vmem:[#allocation5 + $0x4] sm:$0xf] %vm87_vm1, %v112_v32 }
 0x14c   :  { %156 = shalt.err (!%p153_p9)
}
 0x14d   :  { %101 = dma.vmem_to_hbm [thread:$0]  %s96_s23, 128, %s218_s3, [#allocation4], %s170_s15, %s170_s15, %s171_s16  }
 0x14e   :  { %167 = dma.done.wait [#allocation4], 128  }
 0x14f   :  { %168 = vsyncadd [#allocation4], 4294967168 }
 0x150   :  { %105 = vsyncpa [#allocation3], 1 }
 0x151   :  { %106 = vsyncpa [#allocation4], 1 }

</bundles_post_ra>
